<compile_context>
chip_gen: v7x
topology: tpu7x:2x2x1
jax: 0.10.0
libtpu: 0.0.40
codegen_flags: <defaults>
</compile_context>

<pallas_src>
import functools

import jax
import jax.numpy as jnp
from jax import lax
from jax.experimental import pallas as pl
from jax.experimental.pallas import tpu as pltpu


def _round_up(x: int, m: int) -> int:
    return ((x + m - 1) // m) * m


def _cdiv(a: int, b: int) -> int:
    return (a + b - 1) // b


def _vmem_budget_bytes() -> int:
    """~75% of physical VMEM (leave headroom for Mosaic scratch / spills)."""
    try:
        cap = int(pltpu.get_tpu_info().vmem_capacity_bytes)
    except Exception:          # conservative fallback: assume v7x's 64 MiB
        cap = 64 << 20
    return cap * 3 // 4


# ---------------------------------------------------------------------------
# Kernels
# ---------------------------------------------------------------------------

def _fused_kernel(x_ref, wt_ref, b_ref, o_ref, *, tn, col_axis, single_col,
                  use_residual, precision):
    """One (tm, tn) output tile, contracting the full feature dim in one shot.

    x_ref : (tm, D)   row tile of x (full feature width, resident)
    wt_ref: (D, tn)   column stripe of W^T ((in, out) layout -> pure MXU)
    b_ref : (1, D)    full bias, resident in VMEM
    """
    y = lax.dot_general(
        x_ref[...], wt_ref[...],
        dimension_numbers=(((1,), (0,)), ((), ())),
        precision=precision,
        preferred_element_type=jnp.float32)               # (tm, tn) f32

    if single_col:
        col = slice(None)                                  # tn == D
    else:
        col = pl.ds(pl.multiple_of(pl.program_id(col_axis) * tn, 128), tn)

    y = y + b_ref[:, col].astype(jnp.float32)              # (1, tn) broadcasts
    if use_residual:
        # Residual from the already-resident x tile: no second HBM read of x.
        y = y + x_ref[:, col].astype(jnp.float32)
    o_ref[...] = y.astype(o_ref.dtype)


def _ktiled_kernel(x_ref, wt_ref, b_ref, *rest, use_residual, precision):
    """K-tiled variant: grid (rows, cols, K); f32 VMEM accumulator scratch.

    x_ref : (tm, tk), wt_ref : (tk, tn), b_ref : (1, tn),
    rest  : ([res_ref (tm, tn)], o_ref (tm, tn), acc_ref (tm, tn) f32 scratch)
    """
    o_ref, acc_ref = rest[-2], rest[-1]
    k = pl.program_id(2)

    @pl.when(k == 0)
    def _():
        acc_ref[...] = jnp.zeros_like(acc_ref)

    acc_ref[...] += lax.dot_general(
        x_ref[...], wt_ref[...],
        dimension_numbers=(((1,), (0,)), ((), ())),
        precision=precision,
        preferred_element_type=jnp.float32)

    @pl.when(k == pl.num_programs(2) - 1)
    def _():
        y = acc_ref[...] + b_ref[...].astype(jnp.float32)
        if use_residual:
            y = y + rest[0][...].astype(jnp.float32)
        o_ref[...] = y.astype(o_ref.dtype)


# ---------------------------------------------------------------------------
# Wrapper
# ---------------------------------------------------------------------------

def tuned_lens_forward(x, weight, bias=None, *, use_residual: bool = True,
                       tm: int | None = None, tn: int | None = None,
                       tk: int | None = None, cast_operands_to=None,
                       precision=None):
    """TunedLens forward: y = x @ W^T + b (+ x).  `weight` is (out, in) like nn.Linear."""
    orig_shape = x.shape
    D = orig_shape[-1]
    assert weight.shape == (D, D), "TunedLens uses a square (lens_shape, lens_shape) weight"
    out_dtype = x.dtype

    x2 = x.reshape(-1, D)
    N = x2.shape[0]

    if bias is None:
        bias = jnp.zeros((D,), dtype=weight.dtype)
    bias2 = bias.reshape(1, D)

    # v5e knob: bf16 operands halve the dominant weight DMA and unlock the fast
    # MXU path; accumulation stays f32 via preferred_element_type.
    if cast_operands_to is not None:
        x2 = x2.astype(cast_operands_to)
        weight = weight.astype(cast_operands_to)
    # Mixed activation/weight dtypes: promote once in HBM, never per tile.
    if x2.dtype != weight.dtype:
        cd = jnp.promote_types(x2.dtype, weight.dtype)
        x2, weight = x2.astype(cd), weight.astype(cd)

    # One wrapper-side transpose to (in, out): the in-kernel contraction is then
    # k-major (no per-tile XLU transpose).  For a static lens, cache weight.T
    # outside the forward so this is truly one-time.
    w_t = weight.T                                           # (in, out)

    x_b = jnp.dtype(x2.dtype).itemsize
    w_b = jnp.dtype(w_t.dtype).itemsize
    b_b = jnp.dtype(bias2.dtype).itemsize
    o_b = jnp.dtype(out_dtype).itemsize

    # ---- Row tile: target the 256-wide MXU, but minimise row padding. ----
    if tm is None:
        tm = _round_up(_cdiv(N, max(1, _cdiv(N, 256))), 8)
    tm = max(8, _round_up(tm, 8))
    N_pad = _round_up(max(N, 1), tm)
    if N_pad != N:
        x2 = jnp.pad(x2, ((0, N_pad - N), (0, 0)))

    # ---- Out-feature (lane) tile: multiple of 128 dividing D (or D itself). ----
    if tn is None:
        tn = next((t for t in (512, 256, 128) if D % t == 0), D)
    assert D % tn == 0 and (tn == D or tn % 128 == 0), "tn must divide D and be lane-aligned"

    n_row, n_col = N_pad // tm, D // tn
    budget = _vmem_budget_bytes()

    def _fused_vmem(tm_, tn_):
        # double-buffered x / W^T / bias / out tiles + f32 intermediate & temps
        return (2 * tm_ * D * x_b + 2 * D * tn_ * w_b + 2 * D * b_b
                + 2 * tm_ * tn_ * o_b + 2 * tm_ * tn_ * 4 + (2 << 20))

    # Full-D contraction when its tiles fit comfortably in VMEM; otherwise
    # K-tile so per-step VMEM is independent of D (v7x: 64 MiB) instead of
    # shrinking tn below the 256-wide MXU.
    use_ktiled = tk is not None
    if not use_ktiled and D % 128 == 0 and _fused_vmem(tm, tn) > budget:
        use_ktiled = True

    if use_ktiled:
        if tk is None:
            tk = next((t for t in (1024, 512, 256, 128) if D % t == 0), D)
        assert D % tk == 0 and (tk == D or tk % 128 == 0), "tk must divide D and be lane-aligned"
        n_k = D // tk

        grid = (n_row, n_col, n_k)
        in_specs = [
            pl.BlockSpec((tm, tk), lambda i, j, k: (i, k)),     # x K-slab
            pl.BlockSpec((tk, tn), lambda i, j, k: (k, j)),     # W^T block
            pl.BlockSpec((1, tn), lambda i, j, k: (0, j)),      # bias slice
        ]
        inputs = [x2, w_t, bias2]
        if use_residual:
            # With K-tiling the current x slab doesn't contain the output
            # columns, so the residual needs its own (tm, tn) block.  This path
            # only triggers for very large D, where the D^2 weight stream
            # dominates HBM traffic anyway.
            in_specs.append(pl.BlockSpec((tm, tn), lambda i, j, k: (i, j)))
            inputs.append(x2)
        out_spec = pl.BlockSpec((tm, tn), lambda i, j, k: (i, j))
        scratch = [pltpu.VMEM((tm, tn), jnp.float32)]
        dims = ("parallel", "parallel", "arbitrary")
        kern = functools.partial(_ktiled_kernel, use_residual=use_residual,
                                 precision=precision)

        est = (2 * tm * tk * x_b + 2 * tk * tn * w_b + 2 * tn * b_b
               + 2 * tm * tn * o_b + (2 * tm * tn * x_b if use_residual else 0)
               + 3 * tm * tn * 4 + (2 << 20))
        bytes_acc = (n_col * N_pad * D * x_b + n_row * D * D * w_b
                     + n_row * D * b_b
                     + (N_pad * D * x_b if use_residual else 0)
                     + N_pad * D * o_b)
    else:
        # Grid order: keep the more expensive operand resident across the inner
        # axis.  rows-outer -> x read once, W^T re-streamed once per row tile;
        # cols-outer -> W^T read once, x re-streamed once per column stripe.
        rows_outer_traffic = N_pad * D * x_b + n_row * D * D * w_b
        cols_outer_traffic = n_col * N_pad * D * x_b + D * D * w_b
        rows_outer = rows_outer_traffic <= cols_outer_traffic

        if rows_outer:
            grid = (n_row, n_col)
            col_axis = 1
            x_spec = pl.BlockSpec((tm, D), lambda i, j: (i, 0))
            w_spec = pl.BlockSpec((D, tn), lambda i, j: (0, j))
            b_spec = pl.BlockSpec((1, D), lambda i, j: (0, 0))
            out_spec = pl.BlockSpec((tm, tn), lambda i, j: (i, j))
        else:
            grid = (n_col, n_row)
            col_axis = 0
            x_spec = pl.BlockSpec((tm, D), lambda j, i: (i, 0))
            w_spec = pl.BlockSpec((D, tn), lambda j, i: (0, j))
            b_spec = pl.BlockSpec((1, D), lambda j, i: (0, 0))
            out_spec = pl.BlockSpec((tm, tn), lambda j, i: (i, j))

        in_specs = [x_spec, w_spec, b_spec]
        inputs = [x2, w_t, bias2]
        scratch = []
        dims = ("parallel", "parallel")
        kern = functools.partial(_fused_kernel, tn=tn, col_axis=col_axis,
                                 single_col=(n_col == 1),
                                 use_residual=use_residual, precision=precision)

        est = _fused_vmem(tm, tn)
        bytes_acc = (min(rows_outer_traffic, cols_outer_traffic)
                     + D * b_b + N_pad * D * o_b)

    # VMEM request: enough for the estimate + slack, never the whole chip.
    vmem_limit = int(max(est + (4 << 20), 32 << 20))
    vmem_limit = int(min(vmem_limit, max(budget, est + (2 << 20))))

    cost = pl.CostEstimate(
        flops=int(2 * N_pad * D * D + (2 if use_residual else 1) * N_pad * D),
        transcendentals=0,
        bytes_accessed=int(bytes_acc))

    out = pl.pallas_call(
        kern,
        out_shape=jax.ShapeDtypeStruct((N_pad, D), out_dtype),
        grid_spec=pltpu.PrefetchScalarGridSpec(
            num_scalar_prefetch=0,
            grid=grid,
            in_specs=in_specs,
            out_specs=out_spec,
            scratch_shapes=scratch),
        compiler_params=pltpu.CompilerParams(
            dimension_semantics=dims,
            vmem_limit_bytes=vmem_limit),
        cost_estimate=cost,
    )(*inputs)

    if N_pad != N:
        out = out[:N]
    return out.reshape(orig_shape)


if __name__ == "__main__":
    key = jax.random.PRNGKey(0)
    kx, kw, kb = jax.random.split(key, 3)

    # Small shapes implied by the module: a stream of hidden-state rows.
    batch, seq, hidden = 2, 8, 32
    x = jax.random.normal(kx, (batch, seq, hidden), dtype=jnp.float32)
    weight = 0.02 * jax.random.normal(kw, (hidden, hidden), dtype=jnp.float32)
    bias = 0.01 * jax.random.normal(kb, (hidden,), dtype=jnp.float32)

    # use_residual=True (module default).
    y = jax.block_until_ready(tuned_lens_forward(x, weight, bias, use_residual=True))
    y_ref = jnp.einsum("bsd,ed->bse", x, weight) + bias + x
    assert y.shape == x.shape and y.dtype == x.dtype
    assert jnp.allclose(y, y_ref, atol=1e-4, rtol=1e-4), "mismatch vs reference"

    # Module-default init (zero weight / bias, residual on) => identity map.
    zero_w = jnp.zeros((hidden, hidden), dtype=jnp.float32)
    zero_b = jnp.zeros((hidden,), dtype=jnp.float32)
    y_id = jax.block_until_ready(tuned_lens_forward(x, zero_w, zero_b, use_residual=True))
    assert jnp.allclose(y_id, x, atol=1e-6), "zero-init + residual should be identity"

    # use_residual=False branch.
    y_nr = jax.block_until_ready(tuned_lens_forward(x, weight, bias, use_residual=False))
    y_nr_ref = jnp.einsum("bsd,ed->bse", x, weight) + bias
    assert jnp.allclose(y_nr, y_nr_ref, atol=1e-4, rtol=1e-4), "no-residual mismatch"

    # Fused multi-tile path: ragged row count (padding), multi-row + multi-column
    # grid; traffic heuristic picks the cols-outer (weight-resident) ordering.
    N2, D2 = 50, 256
    k1, k2, k3 = jax.random.split(jax.random.PRNGKey(1), 3)
    x2 = jax.random.normal(k1, (N2, D2), dtype=jnp.float32)
    w2 = 0.02 * jax.random.normal(k2, (D2, D2), dtype=jnp.float32)
    b2 = 0.01 * jax.random.normal(k3, (D2,), dtype=jnp.float32)
    ref2 = x2 @ w2.T + b2 + x2
    y2 = jax.block_until_ready(
        tuned_lens_forward(x2, w2, b2, use_residual=True, tm=16, tn=128))
    # Loose tolerance: default-precision f32 matmuls may differ slightly between
    # the XLA reference and the in-kernel MXU path.
    assert jnp.allclose(y2, ref2, atol=5e-3, rtol=5e-3), "tiled-path mismatch"

    # Fused rows-outer ordering with >1 column tile: exercises the dynamic lane
    # slice of the resident x tile for bias + residual.
    x3 = jax.random.normal(jax.random.PRNGKey(2), (8, D2), dtype=jnp.float32)
    ref3 = x3 @ w2.T + b2 + x3
    y3 = jax.block_until_ready(tuned_lens_forward(x3, w2, b2, tn=128))
    assert jnp.allclose(y3, ref3, atol=5e-3, rtol=5e-3), "rows-outer mismatch"

    # K-tiled path (feature-reduction grid axis + f32 accumulator), with and
    # without the residual.
    x4 = jax.random.normal(jax.random.PRNGKey(3), (70, D2), dtype=jnp.float32)
    ref4 = x4 @ w2.T + b2 + x4
    y4 = jax.block_until_ready(
        tuned_lens_forward(x4, w2, b2, use_residual=True, tm=32, tn=128, tk=128))
    assert jnp.allclose(y4, ref4, atol=5e-3, rtol=5e-3), "K-tiled mismatch"
    y4nr = jax.block_until_ready(
        tuned_lens_forward(x4, w2, b2, use_residual=False, tm=32, tn=128, tk=128))
    assert jnp.allclose(y4nr, ref4 - x4, atol=5e-3, rtol=5e-3), "K-tiled no-residual mismatch"

    # v5e fast-path knob: bf16 operand pre-cast (accumulation stays f32).
    y5 = jax.block_until_ready(
        tuned_lens_forward(x2, w2, b2, cast_operands_to=jnp.bfloat16))
    assert y5.dtype == x2.dtype
    assert jnp.allclose(y5, ref2, atol=5e-2, rtol=5e-2), "bf16-cast mismatch"

    print("KERNEL_OK")
</pallas_src>

<mosaic_0001>
module attributes {stable_mosaic.version = 11 : i64} {
  func.func @_fused_kernel(%arg0: i32, %arg1: i32, %arg2: memref<16x32xf32, #tpu.memory_space<vmem>>, %arg3: memref<32x32xf32, #tpu.memory_space<vmem>>, %arg4: memref<1x32xf32, #tpu.memory_space<vmem>>, %arg5: memref<16x32xf32, #tpu.memory_space<vmem>>) attributes {dimension_semantics = [#tpu.dimension_semantics<parallel>, #tpu.dimension_semantics<parallel>], iteration_bounds = array<i64: 1, 1>, scalar_prefetch = 0 : i64, scratch_operands = 0 : i64, tpu.core_type = #tpu.core_type<tc>, window_params = [{transform_indices = @transform_0, window_bounds = array<i64: 16, 32>}, {transform_indices = @transform_1, window_bounds = array<i64: 32, 32>}, {pipeline_mode = #tpu.pipeline_mode<synchronous>, transform_indices = @transform_2, window_bounds = array<i64: 1, 32>}, {transform_indices = @transform_3, window_bounds = array<i64: 16, 32>}]} {
    %c0 = arith.constant 0 : index
    %c0_0 = arith.constant 0 : index
    %0 = vector.load %arg2[%c0, %c0_0] : memref<16x32xf32, #tpu.memory_space<vmem>>, vector<16x32xf32>
    %c0_1 = arith.constant 0 : index
    %c0_2 = arith.constant 0 : index
    %1 = vector.load %arg3[%c0_1, %c0_2] : memref<32x32xf32, #tpu.memory_space<vmem>>, vector<32x32xf32>
    %cst = arith.constant dense<0.000000e+00> : vector<16x32xf32>
    %2 = tpu.matmul %0, %1, %cst {dimension_numbers = #tpu.dot_dimension_numbers<[1], [0], [0], [1], [0, 0, 1, 1], [], []>} : vector<16x32xf32>, vector<32x32xf32>, vector<16x32xf32> -> vector<16x32xf32>
    %c0_3 = arith.constant 0 : index
    %c0_4 = arith.constant 0 : index
    %3 = vector.load %arg4[%c0_3, %c0_4] : memref<1x32xf32, #tpu.memory_space<vmem>>, vector<1x32xf32>
    %4 = vector.broadcast %3 : vector<1x32xf32> to vector<16x32xf32>
    %5 = arith.addf %2, %4 : vector<16x32xf32>
    %c0_5 = arith.constant 0 : index
    %c0_6 = arith.constant 0 : index
    %6 = vector.load %arg2[%c0_5, %c0_6] : memref<16x32xf32, #tpu.memory_space<vmem>>, vector<16x32xf32>
    %7 = arith.addf %5, %6 : vector<16x32xf32>
    %c0_7 = arith.constant 0 : index
    %c0_8 = arith.constant 0 : index
    %8 = vector.load %arg5[%c0_7, %c0_8] : memref<16x32xf32, #tpu.memory_space<vmem>>, vector<16x32xf32>
    tpu.vector_store %arg5[%c0_7, %c0_8], %7 {strides = array<i32>} : memref<16x32xf32, #tpu.memory_space<vmem>>, vector<16x32xf32>,
    return
  }
  func.func @transform_0(%arg0: i32, %arg1: i32) -> (i32, i32) {
    %c0_i32 = arith.constant 0 : i32
    %c0_i32_0 = arith.constant 0 : i32
    return %arg0, %c0_i32 : i32, i32
  }
  func.func @transform_1(%arg0: i32, %arg1: i32) -> (i32, i32) {
    %c0_i32 = arith.constant 0 : i32
    %c0_i32_0 = arith.constant 0 : i32
    return %c0_i32, %arg1 : i32, i32
  }
  func.func @transform_2(%arg0: i32, %arg1: i32) -> (i32, i32) {
    %c0_i32 = arith.constant 0 : i32
    %c0_i32_0 = arith.constant 0 : i32
    %c0_i32_1 = arith.constant 0 : i32
    return %c0_i32, %c0_i32_0 : i32, i32
  }
  func.func @transform_3(%arg0: i32, %arg1: i32) -> (i32, i32) {
    %c0_i32 = arith.constant 0 : i32
    return %arg0, %arg1 : i32, i32
  }
}

</mosaic_0001>

<bundles_post_ra>
// kernel: tpu_custom_call.1
= control target key start
LH: loop header
LB: loop body
LE: loop exit
PB: predicated region body
PF: predicated region fallthrough
CT: control target
= control target key end

     0   :  { %8 = vsyncpa [#allocation3], 0  ;;  %s342_s0 = inlined_call_operand.hbm [shape: f32[16,32], index: 0, kind: input, shape index: {}]   ;;  %s343_s1 = inlined_call_operand.hbm [shape: f32[32,32], index: 1, kind: input, shape index: {}]   ;;  %s344_s2 = inlined_call_operand.vmem [shape: f32[1,32], index: 2, kind: input, shape index: {}]   ;;  %s345_s3 = inlined_call_operand.hbm [shape: f32[16,32], index: 3, kind: output, shape index: {}]  }
   0x1   :  { %9 = vsyncpa [#allocation6], 0 }
   0x2   :  { %10 = vsyncpa [#allocation4], 0  ;;  %s265_s12 = smov [#allocation2]   ;;  %s193_s16 = scalar_lea.hbm %s342_s0, 256 }
   0x3   :  { %s16_s13 = sshll.u32 %s265_s12, 4  ;;  %p194_p0 = scmp.ne.s32.totalorder %s342_s0, %s193_s16  ;;  %s17_s13 = int_to_ptr.vmem [resolvable:$true] %s16_s13 }
   0x4   :  { %p197_p1 = scmp.lt.u32.totalorder %s193_s16, %s342_s0 }
   0x6   :  { %p199_p2 = pnand %p197_p1, %p194_p0 }
   0x8   :  { %202 = shalt.err (!%p199_p2)
}
   0x9   :  { %s203_s21 = scalar_lea.vmem %s17_s13, 256  ;;  %p208_p4 = scmp.lt.s32.totalorder %s17_s13, %s17_s13 }
   0xa   :  { %p204_p3 = scmp.ne.s32.totalorder %s17_s13, %s203_s21  ;;  %p209_p5 = scmp.lt.s32.totalorder %s203_s21, %s203_s21 }
   0xc   :  { %p210_p6 = por %p209_p5, %p208_p4 }
   0xe   :  { %p211_p7 = pnand %p210_p6, %p204_p3 }
  0x10   :  { %214 = shalt.err (!%p211_p7)
}
  0x11   :  { %s266_s22 = smov 128   ;;  %s267_s23 = smov 8  }
  0x12   :  { %22 = dma.hbm_to_vmem [thread:$0]  %s342_s0, 256, %s17_s13, [#allocation3], %s266_s22, %s266_s22, %s267_s23  }
  0x13   :  { %s268_s26 = smov [#allocation5]   ;;  %s215_s30 = scalar_lea.hbm %s343_s1, 512 }
  0x14   :  { %s28_s27 = sshll.u32 %s268_s26, 4  ;;  %p216_p8 = scmp.ne.s32.totalorder %s343_s1, %s215_s30  ;;  %s29_s27 = int_to_ptr.vmem [resolvable:$true] %s28_s27 }
  0x15   :  { %p219_p9 = scmp.lt.u32.totalorder %s215_s30, %s343_s1 }
  0x17   :  { %p221_p10 = pnand %p219_p9, %p216_p8 }
  0x19   :  { %224 = shalt.err (!%p221_p10)
}
  0x1a   :  { %s225_s8 = scalar_lea.vmem %s29_s27, 512  ;;  %p230_p12 = scmp.lt.s32.totalorder %s29_s27, %s29_s27 }
  0x1b   :  { %p226_p11 = scmp.ne.s32.totalorder %s29_s27, %s225_s8  ;;  %p231_p13 = scmp.lt.s32.totalorder %s225_s8, %s225_s8 }
  0x1d   :  { %p232_p0 = por %p231_p13, %p230_p12 }
  0x1f   :  { %p233_p1 = pnand %p232_p0, %p226_p11 }
  0x21   :  { %236 = shalt.err (!%p233_p1)
}
  0x22   :  { %34 = dma.hbm_to_vmem [thread:$0]  %s343_s1, 512, %s29_s27, [#allocation6], %s266_s22, %s266_s22, %s267_s23  }
  0x23   :  { %259 = dma.done.wait [#allocation3], 256  }
  0x24   :  { %260 = vsyncadd [#allocation3], 4294967040 }
  0x25   :  { %261 = dma.done.wait [#allocation6], 512  }
  0x26   :  { %262 = vsyncadd [#allocation6], 4294966784  ;;  %vm56_vm0 = vcmask 261120   ;;  %v45_v0 = vld [vmem:[#allocation5] sm:$0xff]  ;;  %v46_v1 = vld [vmem:[#allocation5 + $0x8] sm:$0xff]  ;;  %s269_s11 = smov [#allocation7]  }
  0x27   :  { %v47_v2 = vld [vmem:[#allocation5 + $0x10] sm:$0xff]  ;;  %v180_v3 = vpack.c.bf16 %v46_v1, %v45_v0  ;;  %v48_v4 = vld [vmem:[#allocation5 + $0x18] sm:$0xff]  ;;  %s147_s12 = sshll.u32 %s269_s11, 4  ;;  %s148_s12 = int_to_ptr.vmem [resolvable:$true] %s147_s12 }
  0x28   :  { %v43_v5 = vld [vmem:[#allocation2] sm:$0xff]  ;;  %v184_v6 = vpack.c.bf16 %v48_v4, %v47_v2  ;;  %v44_v7 = vld [vmem:[#allocation2 + $0x8] sm:$0xff]  ;;  %s237_s13 = scalar_lea.vmem %s148_s12, 256  ;;  %p242_p3 = scmp.lt.s32.totalorder %s148_s12, %s148_s12 }
  0x29   :  { %177 = vmatprep.mubr.msk.f32.mxu0 %vm56_vm0, %v43_v5  ;;  %181 = vmatprep.subr.bf16.mxu0 %v180_v3  ;;  %v160_v8 = vld [vmem:[%s344_s2] ss:$0 sm:$0xff]  ;;  %p238_p2 = scmp.ne.s32.totalorder %s148_s12, %s237_s13  ;;  %p243_p4 = scmp.lt.s32.totalorder %s237_s13, %s237_s13 }
  0x2a   :  { %183 = vmatpush3.bf16.msra.mxu0 %v180_v3 }
  0x2b   :  { %185 = vmatprep.subr.bf16.mxu0 %v184_v6  ;;  %p244_p5 = por %p243_p4, %p242_p3 }
  0x2d   :  { %p245_p6 = pnand %p244_p5, %p238_p2 }
  0x2e   :  { %187 = vmatpush3.bf16.msra.mxu0 %v184_v6 }
  0x31   :  { %178 = vmatmul.mubr.msk.f32.vlgmr.msra.gmra.mrb[0].mxu0 %vm56_vm0, %v44_v7 }
 0x104   :  { %v179_v9 = vpop.f32.mrb[0].mxu0 }
 0x105   :  { %v135_v10 = vadd.f32 %v179_v9, %v160_v8  ;;  %v129_v11 = vpop.f32.mrb[1].mxu0 }
 0x106   :  { %v130_v12 = vadd.f32 %v160_v8, %v129_v11 }
 0x107   :  { %v139_v13 = vadd.f32 %v135_v10, %v44_v7 }
 0x108   :  { %v138_v14 = vadd.f32 %v130_v12, %v43_v5 }
 0x109   :  { %141 = vst.msk [vmem:[#allocation7 + $0x8] sm:$0xff] %vm56_vm0, %v139_v13 }
 0x10a   :  { %140 = vst.msk [vmem:[#allocation7] sm:$0xff] %vm56_vm0, %v138_v14 }
 0x10b   :  { %248 = shalt.err (!%p245_p6)
}
 0x10c   :  { %s249_s15 = scalar_lea.hbm %s345_s3, 256 }
 0x10d   :  { %p250_p7 = scmp.ne.s32.totalorder %s345_s3, %s249_s15  ;;  %p253_p8 = scmp.lt.u32.totalorder %s249_s15, %s345_s3 }
 0x10f   :  { %p255_p9 = pnand %p253_p8, %p250_p7 }
 0x111   :  { %258 = shalt.err (!%p255_p9)
}
 0x112   :  { %153 = dma.vmem_to_hbm [thread:$0]  %s148_s12, 256, %s345_s3, [#allocation4], %s266_s22, %s266_s22, %s267_s23  }
 0x113   :  { %263 = dma.done.wait [#allocation4], 256  }
 0x114   :  { %264 = vsyncadd [#allocation4], 4294967040 }
 0x115   :  { %157 = vsyncpa [#allocation3], 1 }
 0x116   :  { %158 = vsyncpa [#allocation6], 1 }
 0x117   :  { %159 = vsyncpa [#allocation4], 1 }

</bundles_post_ra>
